<compile_context>
chip_gen: v7x
topology: tpu7x:2x2x1
jax: 0.10.0
libtpu: 0.0.40
codegen_flags: <defaults>
</compile_context>

<pallas_src>
import jax
import jax.numpy as jnp
import numpy as np
from jax.experimental import pallas as pl
from jax.experimental.pallas import tpu as pltpu


def _log_gaussian_kernel(params_ref, x_ref, o_ref):
    # params_ref: SMEM (3,) f32 -> [slope, log2(mode), -1/(2*sigma^2*ln(2))]
    slope = params_ref[0]
    log2_mode = params_ref[1]
    c = params_ref[2]

    # Tile arrives in its native dtype; compute in f32 (v5e fast path).
    x = x_ref[...].astype(jnp.float32)
    d = jnp.log2(x) - log2_mode                    # EUP log2 + VALU sub
    # exp(-d^2/(2 s^2)) == exp2(d*d * (-1/(2 s^2 ln2)))
    pdf = slope * jnp.exp2(d * d * c)              # 2 VALU muls + EUP exp2 + VALU mul
    # torch.clamp(pdf, min=1e-6): lower bound only; NaN propagates as in torch.
    o_ref[...] = jnp.maximum(pdf, jnp.float32(1e-6)).astype(o_ref.dtype)


def log_gaussian_tuning_forward(x, slope, mode, sigma, *, max_tile_rows=1024):
    """Elementwise log-Gaussian tuning curve.

    x: any-shaped array (positive values for a finite result).
    slope / mode / sigma: scalars (python floats or 0-d arrays).
    """
    x = jnp.asarray(x)
    orig_shape = x.shape
    if not jnp.issubdtype(x.dtype, jnp.floating):
        x = x.astype(jnp.float32)
    dtype = x.dtype
    itemsize = jnp.dtype(dtype).itemsize
    n = int(np.prod(orig_shape)) if len(orig_shape) > 0 else 1

    if n == 0:
        return jnp.zeros(orig_shape, dtype=dtype)

    xf = x.reshape(-1)

    # Pick a lane width that divides n -> no pad / no output slice (common case).
    lanes = None
    for cand in (512, 256, 128):
        if n % cand == 0:
            lanes = cand
            break
    padded = False
    if lanes is None:
        # Rare fallback: pad only a sub-tile tail with a positive value so
        # log2 stays finite; output tail is sliced off afterwards.
        lanes = 128
        pad_to = -(-n // lanes) * lanes
        xf = jnp.pad(xf, (0, pad_to - n), constant_values=1.0)
        padded = True

    rows = xf.shape[0] // lanes
    x2d = xf.reshape(rows, lanes)

    # Sublane packing grain: f32 -> 8, bf16/f16 -> 16, 8-bit -> 32.
    grain = {4: 8, 2: 16, 1: 32}.get(itemsize, 8)

    if rows < 2 * grain:
        tile_rows = rows                      # single full-extent block
    else:
        # Aim for >=4 grid steps (lets v7x shard across both TensorCores),
        # rounded to the sublane grain, capped at max_tile_rows for VMEM safety.
        target = -(-rows // 4)
        tile_rows = max(grain, min(max_tile_rows, -(-target // grain) * grain))

    grid = (pl.cdiv(rows, tile_rows),)

    # Precompute derived scalars once; kernel reads them from SMEM.
    slope_f = jnp.asarray(slope, dtype=jnp.float32).reshape(())
    mode_f = jnp.asarray(mode, dtype=jnp.float32).reshape(())
    sigma_f = jnp.asarray(sigma, dtype=jnp.float32).reshape(())
    inv_ln2 = jnp.float32(1.0 / np.log(2.0))
    params = jnp.stack(
        [slope_f,
         jnp.log2(mode_f),
         -inv_ln2 / (2.0 * sigma_f * sigma_f)]).astype(jnp.float32)

    total = rows * lanes
    cost = pl.CostEstimate(
        flops=5 * total,                 # sub + 3 muls + max per element
        transcendentals=2 * total,       # log2 + exp2 per element
        bytes_accessed=2 * itemsize * total,   # native-dtype in + out
    )

    out2d = pl.pallas_call(
        _log_gaussian_kernel,
        out_shape=jax.ShapeDtypeStruct((rows, lanes), dtype),
        grid_spec=pltpu.PrefetchScalarGridSpec(
            num_scalar_prefetch=0,
            grid=grid,
            in_specs=[
                pl.BlockSpec(memory_space=pltpu.MemorySpace.SMEM),   # params (3,)
                pl.BlockSpec((tile_rows, lanes), lambda i: (i, 0)),  # x tile
            ],
            out_specs=pl.BlockSpec((tile_rows, lanes), lambda i: (i, 0)),
        ),
        compiler_params=pltpu.CompilerParams(
            dimension_semantics=("parallel",),
        ),
        cost_estimate=cost,
    )(params, x2d)

    out = out2d.reshape(-1)
    if padded:
        out = out[:n]
    return out.reshape(orig_shape)


if __name__ == "__main__":
    key = jax.random.PRNGKey(0)
    k_x, k_s, k_m, k_sg = jax.random.split(key, 4)

    # Parameter init matching the module's __init__ distributions:
    # slope ~ U(0,1), mode ~ U(0,1)+0.5, sigma ~ U(0,1)+0.5
    slope = jax.random.uniform(k_s, (), dtype=jnp.float32)
    mode = jax.random.uniform(k_m, (), dtype=jnp.float32) + 0.5
    sigma = jax.random.uniform(k_sg, (), dtype=jnp.float32) + 0.5

    def reference(xr):
        xr = xr.astype(jnp.float32)
        return jnp.maximum(
            slope * jnp.exp(-((jnp.log2(xr) - jnp.log2(mode)) ** 2)
                            / (2.0 * sigma ** 2)),
            1e-6,
        )

    # 1) small NCHW f32 input (single full-extent block, no pad, no slice)
    x1 = jax.random.uniform(k_x, (2, 4, 16, 16), dtype=jnp.float32,
                            minval=0.1, maxval=8.0)
    out1 = jax.block_until_ready(log_gaussian_tuning_forward(x1, slope, mode, sigma))
    assert out1.shape == x1.shape and out1.dtype == x1.dtype
    np.testing.assert_allclose(np.asarray(out1), np.asarray(reference(x1)),
                               rtol=1e-5, atol=1e-6)

    # 2) f32 input exercising the multi-step grid + masked partial last block
    x2 = jax.random.uniform(k_x, (5, 4, 16, 16), dtype=jnp.float32,
                            minval=0.1, maxval=8.0)
    out2 = jax.block_until_ready(log_gaussian_tuning_forward(x2, slope, mode, sigma))
    np.testing.assert_allclose(np.asarray(out2), np.asarray(reference(x2)),
                               rtol=1e-5, atol=1e-6)

    # 3) bf16 input: native-dtype DMA, f32 compute in-kernel, bf16 output
    x3 = x1.astype(jnp.bfloat16)
    out3 = jax.block_until_ready(log_gaussian_tuning_forward(x3, slope, mode, sigma))
    assert out3.dtype == jnp.bfloat16
    np.testing.assert_allclose(np.asarray(out3, dtype=np.float32),
                               np.asarray(reference(x3)),
                               rtol=1e-2, atol=1e-3)

    print("KERNEL_OK")
</pallas_src>

<mosaic_0001>
module attributes {stable_mosaic.version = 11 : i64} {
  func.func @_log_gaussian_kernel(%arg0: i32, %arg1: memref<3xf32, #tpu.memory_space<smem>>, %arg2: memref<4x512xf32, #tpu.memory_space<vmem>>, %arg3: memref<4x512xf32, #tpu.memory_space<vmem>>) attributes {dimension_semantics = [#tpu.dimension_semantics<parallel>], iteration_bounds = array<i64: 1>, scalar_prefetch = 0 : i64, scratch_operands = 0 : i64, tpu.core_type = #tpu.core_type<tc>, window_params = [{transform_indices = @transform_0, window_bounds = array<i64: 3>}, {transform_indices = @transform_1, window_bounds = array<i64: 4, 512>}, {transform_indices = @transform_2, window_bounds = array<i64: 4, 512>}]} {
    %c0 = arith.constant 0 : index
    %0 = memref.load %arg1[%c0] : memref<3xf32, #tpu.memory_space<smem>>
    %c1 = arith.constant 1 : index
    %1 = memref.load %arg1[%c1] : memref<3xf32, #tpu.memory_space<smem>>
    %c2 = arith.constant 2 : index
    %2 = memref.load %arg1[%c2] : memref<3xf32, #tpu.memory_space<smem>>
    %c0_0 = arith.constant 0 : index
    %c0_1 = arith.constant 0 : index
    %3 = vector.load %arg2[%c0_0, %c0_1] : memref<4x512xf32, #tpu.memory_space<vmem>>, vector<4x512xf32>
    %4 = math.log %3 : vector<4x512xf32>
    %cst = arith.constant 2.000000e+00 : f32
    %5 = math.log %cst : f32
    %6 = vector.broadcast %5 : f32 to vector<4x512xf32>
    %7 = arith.divf %4, %6 : vector<4x512xf32>
    %8 = vector.broadcast %1 : f32 to vector<4x512xf32>
    %9 = arith.subf %7, %8 : vector<4x512xf32>
    %10 = arith.mulf %9, %9 : vector<4x512xf32>
    %11 = vector.broadcast %2 : f32 to vector<4x512xf32>
    %12 = arith.mulf %10, %11 : vector<4x512xf32>
    %13 = math.exp2 %12 : vector<4x512xf32>
    %14 = vector.broadcast %0 : f32 to vector<4x512xf32>
    %15 = arith.mulf %14, %13 : vector<4x512xf32>
    %cst_2 = arith.constant 9.99999997E-7 : f32
    %16 = vector.broadcast %cst_2 : f32 to vector<4x512xf32>
    %17 = arith.maximumf %15, %16 : vector<4x512xf32>
    %c0_3 = arith.constant 0 : index
    %c0_4 = arith.constant 0 : index
    %18 = vector.load %arg3[%c0_3, %c0_4] : memref<4x512xf32, #tpu.memory_space<vmem>>, vector<4x512xf32>
    tpu.vector_store %arg3[%c0_3, %c0_4], %17 {strides = array<i32>} : memref<4x512xf32, #tpu.memory_space<vmem>>, vector<4x512xf32>,
    return
  }
  func.func @transform_0(%arg0: i32) -> i32 {
    %c0_i32 = arith.constant 0 : i32
    %c0_i32_0 = arith.constant 0 : i32
    return %c0_i32 : i32
  }
  func.func @transform_1(%arg0: i32) -> (i32, i32) {
    %c0_i32 = arith.constant 0 : i32
    %c0_i32_0 = arith.constant 0 : i32
    return %arg0, %c0_i32 : i32, i32
  }
  func.func @transform_2(%arg0: i32) -> (i32, i32) {
    %c0_i32 = arith.constant 0 : i32
    %c0_i32_0 = arith.constant 0 : i32
    return %arg0, %c0_i32 : i32, i32
  }
}

</mosaic_0001>

<bundles_post_ra>
// kernel: tpu_custom_call.1
= control target key start
LH: loop header
LB: loop body
LE: loop exit
PB: predicated region body
PF: predicated region fallthrough
CT: control target
= control target key end

     0   :  { %7 = vsyncpa [#allocation5], 0  ;;  %s207_s0 = inlined_call_operand.hbm [shape: f32[3], index: 0, kind: input, shape index: {}]   ;;  %s208_s1 = inlined_call_operand.hbm [shape: f32[4,512], index: 1, kind: input, shape index: {}]   ;;  %s209_s2 = inlined_call_operand.hbm [shape: f32[4,512], index: 2, kind: output, shape index: {}]  }
   0x1   :  { %8 = vsyncpa [#allocation3], 0 }
   0x2   :  { %9 = vsyncpa [#allocation4], 0  ;;  %s93_s11 = scalar_lea.hbm %s207_s0, 16 }
   0x3   :  { %p94_p0 = scmp.ne.s32.totalorder %s207_s0, %s93_s11  ;;  %p97_p1 = scmp.lt.u32.totalorder %s93_s11, %s207_s0 }
   0x5   :  { %p99_p2 = pnand %p97_p1, %p94_p0 }
   0x7   :  { %102 = shalt.err (!%p99_p2)
}
   0x8   :  { %s153_s16 = smov [#allocation2]   ;;  %s154_s19 = smov [#allocation6]  }
   0x9   :  { %17 = dma.hbm_to_smem %s207_s0, 16, %s153_s16, [#allocation5]  }
   0xa   :  { %s24_s20 = sshll.u32 %s154_s19, 4  ;;  %s103_s23 = scalar_lea.hbm %s208_s1, 256  ;;  %s25_s20 = int_to_ptr.vmem [resolvable:$true] %s24_s20 }
   0xb   :  { %p104_p3 = scmp.ne.s32.totalorder %s208_s1, %s103_s23  ;;  %p107_p4 = scmp.lt.u32.totalorder %s103_s23, %s208_s1 }
   0xd   :  { %p109_p5 = pnand %p107_p4, %p104_p3 }
   0xf   :  { %112 = shalt.err (!%p109_p5)
}
  0x10   :  { %s113_s28 = scalar_lea.vmem %s25_s20, 256  ;;  %p118_p7 = scmp.lt.s32.totalorder %s25_s20, %s25_s20 }
  0x11   :  { %p114_p6 = scmp.ne.s32.totalorder %s25_s20, %s113_s28  ;;  %p119_p8 = scmp.lt.s32.totalorder %s113_s28, %s113_s28 }
  0x13   :  { %p120_p9 = por %p119_p8, %p118_p7 }
  0x15   :  { %p121_p10 = pnand %p120_p9, %p114_p6 }
  0x17   :  { %124 = shalt.err (!%p121_p10)
}
  0x18   :  { %27 = dma.hbm_to_vmem [thread:$0]  %s208_s1, 256, %s25_s20, [#allocation3]  }
  0x19   :  { %147 = dma.done.wait [#allocation5], 16  }
  0x1a   :  { %148 = vsyncadd [#allocation5], 4294967280 }
  0x1b   :  { %149 = dma.done.wait [#allocation3], 256  }
  0x1c   :  { %150 = vsyncadd [#allocation3], 4294967040 }
  0x1d   :  { %34 = sfence }
  0x1e   :  { %v38_v0 = vld [vmem:[#allocation6] sm:$0xff]  ;;  %v39_v1 = vld [vmem:[#allocation6 + $0x8] sm:$0xff]  ;;  %s80_s30 = sld [smem:[#allocation2 + $0x1]]  ;;  %s81_s3 = sld [smem:[#allocation2 + $0x2]] }
  0x1f   :  { %85 = vlog2.f32 %v38_v0  ;;  %s35_s1 = sld [smem:[#allocation2]]  ;;  %s155_s4 = smov [#allocation7]  }
  0x20   :  { %87 = vlog2.f32 %v39_v1  ;;  %s70_s5 = sshll.u32 %s155_s4, 4  ;;  %s71_s5 = int_to_ptr.vmem [resolvable:$true] %s70_s5 }
  0x21   :  { %s125_s6 = scalar_lea.vmem %s71_s5, 256  ;;  %p130_p12 = scmp.lt.s32.totalorder %s71_s5, %s71_s5 }
  0x22   :  { %p126_p11 = scmp.ne.s32.totalorder %s71_s5, %s125_s6  ;;  %p131_p13 = scmp.lt.s32.totalorder %s125_s6, %s125_s6 }
  0x24   :  { %v47_v5 = vstv %s80_s30  ;;  %v52_v10 = vstv %s81_s3  ;;  %p132_p0 = por %p131_p13, %p130_p12 }
  0x25   :  { %v57_v16 = vstv %s35_s1 }
  0x26   :  { %p133_p1 = pnand %p132_p0, %p126_p11 }
  0x29   :  { %v86_v2 = vpop.eup %85 }
  0x2a   :  { %v88_v3 = vpop.eup %87  ;;  %v41_v4 = vmul.f32 0.6931472, %v86_v2 }
  0x2b   :  { %v43_v6 = vmul.f32 0.6931472, %v88_v3 }
  0x2c   :  { %v45_v7 = vmul.f32 1.442695, %v41_v4 }
  0x2d   :  { %v46_v8 = vmul.f32 1.442695, %v43_v6 }
  0x2e   :  { %v48_v9 = vsub.f32 %v45_v7, %v47_v5 }
  0x2f   :  { %v49_v11 = vsub.f32 %v46_v8, %v47_v5 }
  0x30   :  { %v50_v12 = vmul.f32 %v48_v9, %v48_v9 }
  0x31   :  { %v51_v13 = vmul.f32 %v49_v11, %v49_v11 }
  0x32   :  { %v53_v14 = vmul.f32 %v52_v10, %v50_v12 }
  0x33   :  { %v54_v15 = vmul.f32 %v52_v10, %v51_v13 }
  0x34   :  { %89 = vpow2.f32 %v53_v14 }
  0x35   :  { %91 = vpow2.f32 %v54_v15 }
  0x3e   :  { %v90_v17 = vpop.eup %89 }
  0x3f   :  { %v92_v18 = vpop.eup %91  ;;  %v58_v19 = vmul.f32 %v90_v17, %v57_v16 }
  0x40   :  { %v59_v20 = vmul.f32 %v92_v18, %v57_v16 }
  0x41   :  { %v60_v21 = vmax.f32 %v58_v19, 1e-06 }
  0x42   :  { %v61_v22 = vmax.f32 %v59_v20, 1e-06 }
  0x43   :  { %62 = vst [vmem:[#allocation7] sm:$0xff] %v60_v21 }
  0x44   :  { %63 = vst [vmem:[#allocation7 + $0x8] sm:$0xff] %v61_v22 }
  0x45   :  { %136 = shalt.err (!%p133_p1)
}
  0x46   :  { %s137_s9 = scalar_lea.hbm %s209_s2, 256 }
  0x47   :  { %p138_p2 = scmp.ne.s32.totalorder %s209_s2, %s137_s9  ;;  %p141_p3 = scmp.lt.u32.totalorder %s137_s9, %s209_s2 }
  0x49   :  { %p143_p4 = pnand %p141_p3, %p138_p2 }
  0x4b   :  { %146 = shalt.err (!%p143_p4)
}
  0x4c   :  { %73 = dma.vmem_to_hbm [thread:$0]  %s71_s5, 256, %s209_s2, [#allocation4]  }
  0x4d   :  { %151 = dma.done.wait [#allocation4], 256  }
  0x4e   :  { %152 = vsyncadd [#allocation4], 4294967040 }
  0x4f   :  { %77 = vsyncpa [#allocation3], 1 }
  0x50   :  { %78 = vsyncpa [#allocation4], 1 }
  0x51   :  { %79 = vsyncpa [#allocation5], 1 }

</bundles_post_ra>
